<compile_context>
chip_gen: v7x
topology: tpu7x:2x2x1
jax: 0.10.0
libtpu: 0.0.40
codegen_flags: <defaults>
</compile_context>

<pallas_src>
import jax
import jax.numpy as jnp
from jax.experimental import pallas as pl
from jax.experimental.pallas import tpu as pltpu

NEG_SLOPE = 0.01   # F.leaky_relu default negative slope
N_OUT = 3          # true output width of the model
PAD_OUT = 8        # output padded to 8 columns (sublane-friendly, dense writeback)


def _leaky_relu(x):
    return jnp.where(x > 0, x, NEG_SLOPE * x)


def _round_up(n, m):
    return ((n + m - 1) // m) * m


def mlp_kernel(x_ref, w1_ref, b1_ref, w2_ref, b2_ref, w3_ref, b3_ref, o_ref):
    # In-kernel f32 -> bf16 cast (VPU work hidden under the streaming DMA); avoids a
    # separate wrapper-side astype pass over x in HBM.
    x = x_ref[...].astype(w1_ref.dtype)

    # fc1 + leaky_relu  (bf16 operands, f32 accumulation on the MXU)
    h1 = jnp.dot(x, w1_ref[...], preferred_element_type=jnp.float32)
    h1 = _leaky_relu(h1 + b1_ref[...])
    # TODO(synk): nn.Dropout(0.5) is identity here (inference semantics);
    # training-mode stochastic masking is not reproduced.

    # fc2 + leaky_relu
    h2 = jnp.dot(h1.astype(w2_ref.dtype), w2_ref[...],
                 preferred_element_type=jnp.float32)
    h2 = _leaky_relu(h2 + b2_ref[...])

    # last linear (output padded to 8 lanes; extra columns are all-zero weights/bias)
    out = jnp.dot(h2.astype(w3_ref.dtype), w3_ref[...],
                  preferred_element_type=jnp.float32) + b3_ref[...]
    o_ref[...] = out.astype(o_ref.dtype)


def mlp_forward(x, params, *, bm=1024, compute_dtype=jnp.bfloat16):
    """x: (B, 768) float32. params: dict with transposed weights / (1, n) biases."""
    B, D_in = x.shape
    assert D_in == 768

    # Effective batch tile: multiple of 8, capped at 2048, no larger than the padded batch.
    bm_eff = max(8, min(_round_up(bm, 8), 2048))
    b_pad8 = _round_up(B, 8)
    bm_eff = min(bm_eff, b_pad8)
    # v7x: keep >=2 grid steps when the batch is big enough so the "parallel" batch
    # axis can actually be sharded across both TensorCores.
    bm_eff = max(8, min(bm_eff, _round_up(pl.cdiv(b_pad8, 2), 8)))
    b_pad = _round_up(B, bm_eff)

    # Pad only the ragged tail (no-op when already aligned); x stays f32 — the bf16
    # cast happens inside the kernel.
    x_p = x if b_pad == B else jnp.pad(x, ((0, b_pad - B), (0, 0)))

    # Matmul weights in compute_dtype; biases stay f32 (added post-accumulation).
    w1 = params["w1"].astype(compute_dtype)            # (768, 256)
    w2 = params["w2"].astype(compute_dtype)            # (256, 64)
    b1 = params["b1"].astype(jnp.float32)               # (1, 256)
    b2 = params["b2"].astype(jnp.float32)               # (1, 64)

    # Zero-pad the last layer to an 8-wide output (dense, minimal writeback traffic).
    w3 = params["w3"]                                    # (64, 3)
    b3 = params["b3"]                                    # (1, 3)
    w3p = jnp.zeros((w3.shape[0], PAD_OUT), jnp.float32).at[:, :N_OUT].set(w3)
    w3p = w3p.astype(compute_dtype)                      # (64, 8)
    b3p = jnp.zeros((1, PAD_OUT), jnp.float32).at[:, :N_OUT].set(b3)

    grid = (b_pad // bm_eff,)

    def full(a):
        # Whole-array block, constant index map: fetched once, resident across the grid.
        # (pl.Buffered(1) could drop the redundant second weight buffer, but VMEM
        #  headroom is already handled explicitly via vmem_limit_bytes below.)
        return pl.BlockSpec(a.shape, lambda i: (0, 0))

    # Advisory cost: memory-bound (x read + tiny output write dominate).
    flops = 2 * b_pad * (768 * 256 + 256 * 64 + 64 * PAD_OUT)
    weight_bytes = (w1.size + w2.size + w3p.size) * 2 + (b1.size + b2.size + b3p.size) * 4
    bytes_accessed = b_pad * 768 * 4 + b_pad * PAD_OUT * 4 + weight_bytes

    out_p = pl.pallas_call(
        mlp_kernel,
        out_shape=jax.ShapeDtypeStruct((b_pad, PAD_OUT), jnp.float32),
        grid_spec=pltpu.PrefetchScalarGridSpec(
            num_scalar_prefetch=0,
            grid=grid,
            in_specs=[
                pl.BlockSpec((bm_eff, 768), lambda i: (i, 0)),   # x batch tile (f32)
                full(w1), full(b1),
                full(w2), full(b2),
                full(w3p), full(b3p),
            ],
            out_specs=pl.BlockSpec((bm_eff, PAD_OUT), lambda i: (i, 0)),
        ),
        compiler_params=pltpu.CompilerParams(
            dimension_semantics=("parallel",),     # lets v7x shard batch tiles over its 2 TCs
            vmem_limit_bytes=48 * 1024 * 1024,     # covers bm=2048: 2x f32 x tile + weights + scratch
        ),
        cost_estimate=pl.CostEstimate(
            flops=flops, transcendentals=0, bytes_accessed=bytes_accessed),
    )(x_p, w1, b1, w2, b2, w3p, b3p)

    return out_p[:B, :N_OUT]


def init_params(key):
    """Deterministic init mimicking nn.Linear shapes (weights stored transposed)."""
    ks = jax.random.split(key, 6)

    def linear(kw, kb, fan_in, fan_out):
        bound = 1.0 / jnp.sqrt(fan_in)
        w = jax.random.uniform(kw, (fan_in, fan_out), jnp.float32, -bound, bound)
        b = jax.random.uniform(kb, (1, fan_out), jnp.float32, -bound, bound)
        return w, b

    w1, b1 = linear(ks[0], ks[1], 768, 256)
    w2, b2 = linear(ks[2], ks[3], 256, 64)
    w3, b3 = linear(ks[4], ks[5], 64, 3)
    return {"w1": w1, "b1": b1, "w2": w2, "b2": b2, "w3": w3, "b3": b3}


def reference_forward(x, p, compute_dtype=jnp.bfloat16):
    """Pure-JAX reference using the same mixed precision as the kernel.
    (Self-consistency check; f32-fidelity vs the PyTorch model is bounded only by the
    bf16 operand cast — accumulation is f32.)"""
    def mm(a, w):
        return jnp.dot(a.astype(compute_dtype), w.astype(compute_dtype),
                       preferred_element_type=jnp.float32)

    h = _leaky_relu(mm(x, p["w1"]) + p["b1"])
    h = _leaky_relu(mm(h, p["w2"]) + p["b2"])
    return mm(h, p["w3"]) + p["b3"]


if __name__ == "__main__":
    key = jax.random.PRNGKey(0)
    k_x, k_p, k_x2 = jax.random.split(key, 3)
    params = init_params(k_p)

    # Small, non-multiple-of-8 batch: exercises the tail-padding path (grid=(1,)).
    B = 4
    x = jax.random.normal(k_x, (B, 768), jnp.float32)
    out = jax.block_until_ready(mlp_forward(x, params))
    ref = reference_forward(x, params)
    assert out.shape == (B, N_OUT), out.shape
    assert jnp.allclose(out, ref, atol=2e-2, rtol=2e-2), "mismatch vs reference (B=4)"

    # Slightly larger batch with a tiny tile: exercises a multi-step grid (grid=(3,)).
    B2 = 24
    x2 = jax.random.normal(k_x2, (B2, 768), jnp.float32)
    out2 = jax.block_until_ready(mlp_forward(x2, params, bm=8))
    ref2 = reference_forward(x2, params)
    assert out2.shape == (B2, N_OUT), out2.shape
    assert jnp.allclose(out2, ref2, atol=2e-2, rtol=2e-2), "mismatch vs reference (B=24)"

    print("KERNEL_OK")
</pallas_src>

<mosaic_0001>
module attributes {stable_mosaic.version = 11 : i64} {
  func.func @mlp_kernel(%arg0: i32, %arg1: memref<8x768xf32, #tpu.memory_space<vmem>>, %arg2: memref<768x256xbf16, #tpu.memory_space<vmem>>, %arg3: memref<1x256xf32, #tpu.memory_space<vmem>>, %arg4: memref<256x64xbf16, #tpu.memory_space<vmem>>, %arg5: memref<1x64xf32, #tpu.memory_space<vmem>>, %arg6: memref<64x8xbf16, #tpu.memory_space<vmem>>, %arg7: memref<1x8xf32, #tpu.memory_space<vmem>>, %arg8: memref<8x8xf32, #tpu.memory_space<vmem>>) attributes {dimension_semantics = [#tpu.dimension_semantics<parallel>], iteration_bounds = array<i64: 1>, scalar_prefetch = 0 : i64, scratch_operands = 0 : i64, tpu.core_type = #tpu.core_type<tc>, window_params = [{transform_indices = @transform_0, window_bounds = array<i64: 8, 768>}, {pipeline_mode = #tpu.pipeline_mode<synchronous>, transform_indices = @transform_1, window_bounds = array<i64: 768, 256>}, {pipeline_mode = #tpu.pipeline_mode<synchronous>, transform_indices = @transform_2, window_bounds = array<i64: 1, 256>}, {pipeline_mode = #tpu.pipeline_mode<synchronous>, transform_indices = @transform_3, window_bounds = array<i64: 256, 64>}, {pipeline_mode = #tpu.pipeline_mode<synchronous>, transform_indices = @transform_4, window_bounds = array<i64: 1, 64>}, {pipeline_mode = #tpu.pipeline_mode<synchronous>, transform_indices = @transform_5, window_bounds = array<i64: 64, 8>}, {pipeline_mode = #tpu.pipeline_mode<synchronous>, transform_indices = @transform_6, window_bounds = array<i64: 1, 8>}, {transform_indices = @transform_7, window_bounds = array<i64: 8, 8>}]} {
    %c0 = arith.constant 0 : index
    %c0_0 = arith.constant 0 : index
    %0 = vector.load %arg1[%c0, %c0_0] : memref<8x768xf32, #tpu.memory_space<vmem>>, vector<8x768xf32>
    %1 = arith.truncf %0 : vector<8x768xf32> to vector<8x768xbf16>
    %c0_1 = arith.constant 0 : index
    %c0_2 = arith.constant 0 : index
    %2 = vector.load %arg2[%c0_1, %c0_2] : memref<768x256xbf16, #tpu.memory_space<vmem>>, vector<768x256xbf16>
    %cst = arith.constant dense<0.000000e+00> : vector<8x256xf32>
    %3 = tpu.matmul %1, %2, %cst {dimension_numbers = #tpu.dot_dimension_numbers<[1], [0], [0], [1], [0, 0, 1, 1], [], []>} : vector<8x768xbf16>, vector<768x256xbf16>, vector<8x256xf32> -> vector<8x256xf32>
    %c0_3 = arith.constant 0 : index
    %c0_4 = arith.constant 0 : index
    %4 = vector.load %arg3[%c0_3, %c0_4] : memref<1x256xf32, #tpu.memory_space<vmem>>, vector<1x256xf32>
    %5 = vector.broadcast %4 : vector<1x256xf32> to vector<8x256xf32>
    %6 = arith.addf %3, %5 : vector<8x256xf32>
    %cst_5 = arith.constant 0.000000e+00 : f32
    %7 = vector.broadcast %cst_5 : f32 to vector<8x256xf32>
    %8 = arith.cmpf ogt, %6, %7 : vector<8x256xf32>
    %cst_6 = arith.constant 0.00999999977 : f32
    %9 = vector.broadcast %cst_6 : f32 to vector<8x256xf32>
    %10 = arith.mulf %9, %6 : vector<8x256xf32>
    %11 = arith.select %8, %6, %10 : vector<8x256xi1>, vector<8x256xf32>
    %12 = arith.truncf %11 : vector<8x256xf32> to vector<8x256xbf16>
    %c0_7 = arith.constant 0 : index
    %c0_8 = arith.constant 0 : index
    %13 = vector.load %arg4[%c0_7, %c0_8] : memref<256x64xbf16, #tpu.memory_space<vmem>>, vector<256x64xbf16>
    %cst_9 = arith.constant dense<0.000000e+00> : vector<8x64xf32>
    %14 = tpu.matmul %12, %13, %cst_9 {dimension_numbers = #tpu.dot_dimension_numbers<[1], [0], [0], [1], [0, 0, 1, 1], [], []>} : vector<8x256xbf16>, vector<256x64xbf16>, vector<8x64xf32> -> vector<8x64xf32>
    %c0_10 = arith.constant 0 : index
    %c0_11 = arith.constant 0 : index
    %15 = vector.load %arg5[%c0_10, %c0_11] : memref<1x64xf32, #tpu.memory_space<vmem>>, vector<1x64xf32>
    %16 = vector.broadcast %15 : vector<1x64xf32> to vector<8x64xf32>
    %17 = arith.addf %14, %16 : vector<8x64xf32>
    %cst_12 = arith.constant 0.000000e+00 : f32
    %18 = vector.broadcast %cst_12 : f32 to vector<8x64xf32>
    %19 = arith.cmpf ogt, %17, %18 : vector<8x64xf32>
    %cst_13 = arith.constant 0.00999999977 : f32
    %20 = vector.broadcast %cst_13 : f32 to vector<8x64xf32>
    %21 = arith.mulf %20, %17 : vector<8x64xf32>
    %22 = arith.select %19, %17, %21 : vector<8x64xi1>, vector<8x64xf32>
    %23 = arith.truncf %22 : vector<8x64xf32> to vector<8x64xbf16>
    %c0_14 = arith.constant 0 : index
    %c0_15 = arith.constant 0 : index
    %24 = vector.load %arg6[%c0_14, %c0_15] : memref<64x8xbf16, #tpu.memory_space<vmem>>, vector<64x8xbf16>
    %cst_16 = arith.constant dense<0.000000e+00> : vector<8x8xf32>
    %25 = tpu.matmul %23, %24, %cst_16 {dimension_numbers = #tpu.dot_dimension_numbers<[1], [0], [0], [1], [0, 0, 1, 1], [], []>} : vector<8x64xbf16>, vector<64x8xbf16>, vector<8x8xf32> -> vector<8x8xf32>
    %c0_17 = arith.constant 0 : index
    %c0_18 = arith.constant 0 : index
    %26 = vector.load %arg7[%c0_17, %c0_18] : memref<1x8xf32, #tpu.memory_space<vmem>>, vector<1x8xf32>
    %27 = vector.broadcast %26 : vector<1x8xf32> to vector<8x8xf32>
    %28 = arith.addf %25, %27 : vector<8x8xf32>
    %c0_19 = arith.constant 0 : index
    %c0_20 = arith.constant 0 : index
    %29 = vector.load %arg8[%c0_19, %c0_20] : memref<8x8xf32, #tpu.memory_space<vmem>>, vector<8x8xf32>
    tpu.vector_store %arg8[%c0_19, %c0_20], %28 {strides = array<i32>} : memref<8x8xf32, #tpu.memory_space<vmem>>, vector<8x8xf32>,
    return
  }
  func.func @transform_0(%arg0: i32) -> (i32, i32) {
    %c0_i32 = arith.constant 0 : i32
    %c0_i32_0 = arith.constant 0 : i32
    return %arg0, %c0_i32 : i32, i32
  }
  func.func @transform_1(%arg0: i32) -> (i32, i32) {
    %c0_i32 = arith.constant 0 : i32
    %c0_i32_0 = arith.constant 0 : i32
    %c0_i32_1 = arith.constant 0 : i32
    return %c0_i32, %c0_i32_0 : i32, i32
  }
  func.func @transform_2(%arg0: i32) -> (i32, i32) {
    %c0_i32 = arith.constant 0 : i32
    %c0_i32_0 = arith.constant 0 : i32
    %c0_i32_1 = arith.constant 0 : i32
    return %c0_i32, %c0_i32_0 : i32, i32
  }
  func.func @transform_3(%arg0: i32) -> (i32, i32) {
    %c0_i32 = arith.constant 0 : i32
    %c0_i32_0 = arith.constant 0 : i32
    %c0_i32_1 = arith.constant 0 : i32
    return %c0_i32, %c0_i32_0 : i32, i32
  }
  func.func @transform_4(%arg0: i32) -> (i32, i32) {
    %c0_i32 = arith.constant 0 : i32
    %c0_i32_0 = arith.constant 0 : i32
    %c0_i32_1 = arith.constant 0 : i32
    return %c0_i32, %c0_i32_0 : i32, i32
  }
  func.func @transform_5(%arg0: i32) -> (i32, i32) {
    %c0_i32 = arith.constant 0 : i32
    %c0_i32_0 = arith.constant 0 : i32
    %c0_i32_1 = arith.constant 0 : i32
    return %c0_i32, %c0_i32_0 : i32, i32
  }
  func.func @transform_6(%arg0: i32) -> (i32, i32) {
    %c0_i32 = arith.constant 0 : i32
    %c0_i32_0 = arith.constant 0 : i32
    %c0_i32_1 = arith.constant 0 : i32
    return %c0_i32, %c0_i32_0 : i32, i32
  }
  func.func @transform_7(%arg0: i32) -> (i32, i32) {
    %c0_i32 = arith.constant 0 : i32
    %c0_i32_0 = arith.constant 0 : i32
    return %arg0, %c0_i32 : i32, i32
  }
}

</mosaic_0001>

<bundles_post_ra>
// kernel: tpu_custom_call.1
= control target key start
LH: loop header
LB: loop body
LE: loop exit
PB: predicated region body
PF: predicated region fallthrough
CT: control target
= control target key end

     0   :  { %12 = vsyncpa [#allocation3], 0  ;;  %s1593_s0 = inlined_call_operand.vmem [shape: f32[8,768], index: 0, kind: input, shape index: {}]   ;;  %s1594_s1 = inlined_call_operand.hbm [shape: bf16[768,256], index: 1, kind: input, shape index: {}]   ;;  %s1595_s2 = inlined_call_operand.vmem [shape: f32[1,256], index: 2, kind: input, shape index: {}]   ;;  %s1596_s3 = inlined_call_operand.vmem [shape: bf16[256,64], index: 3, kind: input, shape index: {}]   ;;  %s1597_s4 = inlined_call_operand.vmem [shape: f32[1,64], index: 4, kind: input, shape index: {}]   ;;  %s1598_s5 = inlined_call_operand.vmem [shape: bf16[64,8], index: 5, kind: input, shape index: {}]   ;;  %s1599_s6 = inlined_call_operand.vmem [shape: f32[1,8], index: 6, kind: input, shape index: {}]   ;;  %s1600_s7 = inlined_call_operand.hbm [shape: f32[8,8], index: 7, kind: output, shape index: {}]  }
   0x1   :  { %13 = vsyncpa [#allocation4], 0  ;;  %s1436_s24 = smov [#allocation2]   ;;  %s1388_s28 = scalar_lea.hbm %s1594_s1, 12288 }
   0x2   :  { %s21_s25 = sshll.u32 %s1436_s24, 4  ;;  %p1389_p0 = scmp.ne.s32.totalorder %s1594_s1, %s1388_s28  ;;  %s22_s25 = int_to_ptr.vmem [resolvable:$true] %s21_s25 }
   0x3   :  { %p1392_p1 = scmp.lt.u32.totalorder %s1388_s28, %s1594_s1 }
   0x5   :  { %p1394_p2 = pnand %p1392_p1, %p1389_p0 }
   0x7   :  { %1397 = shalt.err (!%p1394_p2)
}
   0x8   :  { %s1398_s10 = scalar_lea.vmem %s22_s25, 12288  ;;  %p1403_p4 = scmp.lt.s32.totalorder %s22_s25, %s22_s25 }
   0x9   :  { %p1399_p3 = scmp.ne.s32.totalorder %s22_s25, %s1398_s10  ;;  %p1404_p5 = scmp.lt.s32.totalorder %s1398_s10, %s1398_s10 }
   0xb   :  { %p1405_p6 = por %p1404_p5, %p1403_p4 }
   0xd   :  { %p1406_p7 = pnand %p1405_p6, %p1399_p3 }
   0xf   :  { %1409 = shalt.err (!%p1406_p7)
}
  0x10   :  { %s1437_s11 = smov 128   ;;  %s1438_s12 = smov 8  }
  0x11   :  { %27 = dma.hbm_to_vmem [thread:$0]  %s1594_s1, 12288, %s22_s25, [#allocation3], %s1437_s11, %s1437_s11, %s1438_s12  }
  0x12   :  { %1432 = dma.done.wait [#allocation3], 12288  }
  0x13   :  { %1433 = vsyncadd [#allocation3], 4294955008  ;;  %v1224_v0 = vld [vmem:[#allocation2 + $0x104] ss:$8 sps:$4 sm:$0xff]   ;;  %v1226_v1 = vld [vmem:[#allocation2 + $0x100] ss:$8 sps:$4 sm:$0xff]  }
  0x14   :  { %683 = vmatprep.subr.bf16.mxu0 %v1224_v0  ;;  %v1227_v2 = vld [vmem:[#allocation2 + $0x114] ss:$8 sps:$4 sm:$0xff]   ;;  %v1229_v3 = vld [vmem:[#allocation2 + $0x110] ss:$8 sps:$4 sm:$0xff]   ;;  %v1230_v4 = vld [vmem:[#allocation2 + $0x124] ss:$8 sps:$4 sm:$0xff]  }
  0x15   :  { %684 = vmatpush1.bf16.msra.mxu0 %v1226_v1  ;;  %v1232_v5 = vld [vmem:[#allocation2 + $0x120] ss:$8 sps:$4 sm:$0xff]   ;;  %v1233_v6 = vld [vmem:[#allocation2 + $0x134] ss:$8 sps:$4 sm:$0xff]   ;;  %v1235_v7 = vld [vmem:[#allocation2 + $0x130] ss:$8 sps:$4 sm:$0xff]  }
  0x16   :  { %685 = vmatprep.subr.bf16.mxu0 %v1227_v2  ;;  %v1236_v8 = vld [vmem:[#allocation2 + $0x144] ss:$8 sps:$4 sm:$0xff]   ;;  %v1238_v9 = vld [vmem:[#allocation2 + $0x140] ss:$8 sps:$4 sm:$0xff]   ;;  %v1239_v10 = vld [vmem:[#allocation2 + $0x154] ss:$8 sps:$4 sm:$0xff]  }
  0x17   :  { %v1241_v11 = vld [vmem:[#allocation2 + $0x150] ss:$8 sps:$4 sm:$0xff]   ;;  %v1242_v12 = vld [vmem:[#allocation2 + $0x164] ss:$8 sps:$4 sm:$0xff]   ;;  %v1271_v14 = vld [vmem:[#allocation2] ss:$8 sps:$4 sm:$0xff]  }
  0x18   :  { %v1269_v13 = vld [vmem:[#allocation2 + $0x4] ss:$8 sps:$4 sm:$0xff]   ;;  %v1244_v15 = vld [vmem:[#allocation2 + $0x160] ss:$8 sps:$4 sm:$0xff]   ;;  %v1245_v16 = vld [vmem:[#allocation2 + $0x174] ss:$8 sps:$4 sm:$0xff]  }
  0x19   :  { %686 = vmatpush1.bf16.msra.mxu0 %v1229_v3  ;;  %642 = vmatprep.subr.bf16.mxu1 %v1269_v13  ;;  %v1275_v17 = vld [vmem:[#allocation2 + $0x14] ss:$8 sps:$4 sm:$0xff]   ;;  %v1277_v18 = vld [vmem:[#allocation2 + $0x10] ss:$8 sps:$4 sm:$0xff]   ;;  %v1281_v22 = vld [vmem:[#allocation2 + $0x24] ss:$8 sps:$4 sm:$0xff]  }
  0x1a   :  { %687 = vmatprep.subr.bf16.mxu0 %v1230_v4  ;;  %643 = vmatpush1.bf16.msra.mxu1 %v1271_v14  ;;  %v45_v19 = vld [vmem:[%s1593_s0 + $0x18] sm:$0xff]  ;;  %v1283_v23 = vld [vmem:[#allocation2 + $0x20] ss:$8 sps:$4 sm:$0xff]   ;;  %v1248_v24 = vld [vmem:[#allocation2 + $0x184] ss:$8 sps:$4 sm:$0xff]   ;;  %vm1440_vm2 = vmmov 0  }
  0x1b   :  { %v1247_v20 = vld [vmem:[#allocation2 + $0x170] ss:$8 sps:$4 sm:$0xff]   ;;  %644 = vmatprep.subr.bf16.mxu1 %v1275_v17  ;;  %v51_v21 = vpack.c.bf16 %v45_v19, %v45_v19  ;;  %v1287_v25 = vld [vmem:[#allocation2 + $0x34] ss:$8 sps:$4 sm:$0xff]   ;;  %v1250_v26 = vld [vmem:[#allocation2 + $0x180] ss:$8 sps:$4 sm:$0xff]  }
  0x1c   :  { %v1289_v27 = vld [vmem:[#allocation2 + $0x30] ss:$8 sps:$4 sm:$0xff]   ;;  %v1251_v28 = vld [vmem:[#allocation2 + $0x194] ss:$8 sps:$4 sm:$0xff]   ;;  %v1293_v29 = vld [vmem:[#allocation2 + $0x44] ss:$8 sps:$4 sm:$0xff]  }
  0x1d   :  { %688 = vmatpush1.bf16.msra.mxu0 %v1232_v5  ;;  %715 = vmatprep.mubr.bf16.mxu0 %v51_v21  ;;  %v1253_v30 = vld [vmem:[#allocation2 + $0x190] ss:$8 sps:$4 sm:$0xff]   ;;  %v1295_v31 = vld [vmem:[#allocation2 + $0x40] ss:$8 sps:$4 sm:$0xff]   ;;  %v1254_v32 = vld [vmem:[#allocation2 + $0x1a4] ss:$8 sps:$4 sm:$0xff]  }
  0x1e   :  { %689 = vmatprep.subr.bf16.mxu0 %v1233_v6  ;;  %645 = vmatpush1.bf16.msra.mxu1 %v1277_v18  ;;  %v1299_v33 = vld [vmem:[#allocation2 + $0x54] ss:$8 sps:$4 sm:$0xff]   ;;  %v1256_v34 = vld [vmem:[#allocation2 + $0x1a0] ss:$8 sps:$4 sm:$0xff]   ;;  %v1301_v35 = vld [vmem:[#allocation2 + $0x50] ss:$8 sps:$4 sm:$0xff]  }
  0x1f   :  { %646 = vmatprep.subr.bf16.mxu1 %v1281_v22  ;;  %v1257_v36 = vld [vmem:[#allocation2 + $0x1b4] ss:$8 sps:$4 sm:$0xff]   ;;  %v1305_v37 = vld [vmem:[#allocation2 + $0x64] ss:$8 sps:$4 sm:$0xff]   ;;  %v1259_v38 = vld [vmem:[#allocation2 + $0x1b0] ss:$8 sps:$4 sm:$0xff]  }
  0x20   :  { %v1307_v39 = vld [vmem:[#allocation2 + $0x60] ss:$8 sps:$4 sm:$0xff]   ;;  %v1260_v40 = vld [vmem:[#allocation2 + $0x1c4] ss:$8 sps:$4 sm:$0xff]   ;;  %v1311_v41 = vld [vmem:[#allocation2 + $0x74] ss:$8 sps:$4 sm:$0xff]  }
  0x21   :  { %690 = vmatpush1.bf16.msra.mxu0 %v1235_v7  ;;  %v1262_v42 = vld [vmem:[#allocation2 + $0x1c0] ss:$8 sps:$4 sm:$0xff]   ;;  %v1313_v43 = vld [vmem:[#allocation2 + $0x70] ss:$8 sps:$4 sm:$0xff]   ;;  %v1263_v44 = vld [vmem:[#allocation2 + $0x1d4] ss:$8 sps:$4 sm:$0xff]  }
  0x22   :  { %691 = vmatprep.subr.bf16.mxu0 %v1236_v8  ;;  %647 = vmatpush1.bf16.msra.mxu1 %v1283_v23  ;;  %v1317_v45 = vld [vmem:[#allocation2 + $0x84] ss:$8 sps:$4 sm:$0xff]   ;;  %v1265_v46 = vld [vmem:[#allocation2 + $0x1d0] ss:$8 sps:$4 sm:$0xff]   ;;  %v1319_v47 = vld [vmem:[#allocation2 + $0x80] ss:$8 sps:$4 sm:$0xff]  }
  0x23   :  { %648 = vmatprep.subr.bf16.mxu1 %v1287_v25  ;;  %v1266_v48 = vld [vmem:[#allocation2 + $0x1e4] ss:$8 sps:$4 sm:$0xff]   ;;  %v1323_v49 = vld [vmem:[#allocation2 + $0x94] ss:$8 sps:$4 sm:$0xff]   ;;  %v1268_v50 = vld [vmem:[#allocation2 + $0x1e0] ss:$8 sps:$4 sm:$0xff]  }
  0x24   :  { %v1325_v51 = vld [vmem:[#allocation2 + $0x90] ss:$8 sps:$4 sm:$0xff]   ;;  %v1272_v52 = vld [vmem:[#allocation2 + $0x1f4] ss:$8 sps:$4 sm:$0xff]   ;;  %v1329_v53 = vld [vmem:[#allocation2 + $0xa4] ss:$8 sps:$4 sm:$0xff]  }
  0x25   :  { %692 = vmatpush1.bf16.msra.mxu0 %v1238_v9  ;;  %v1274_v54 = vld [vmem:[#allocation2 + $0x1f0] ss:$8 sps:$4 sm:$0xff]   ;;  %v1331_v56 = vld [vmem:[#allocation2 + $0xa0] ss:$8 sps:$4 sm:$0xff]   ;;  %v1280_v57 = vld [vmem:[#allocation2 + $0x204] ss:$8 sps:$4 sm:$0xff]  }
  0x26   :  { %693 = vmatprep.subr.bf16.mxu0 %v1239_v10  ;;  %649 = vmatpush1.bf16.msra.mxu1 %v1289_v27  ;;  %v44_v55 = vld [vmem:[%s1593_s0 + $0x10] sm:$0xff]  ;;  %v1278_v59 = vld [vmem:[#allocation2 + $0x200] ss:$8 sps:$4 sm:$0xff]   ;;  %v1341_v0 = vld [vmem:[#allocation2 + $0xc4] ss:$8 sps:$4 sm:$0xff]   ;;  %vm991_vm4 = vcmask 523264  }
  0x27   :  { %650 = vmatprep.subr.bf16.mxu1 %v1293_v29  ;;  %v1335_v58 = vld [vmem:[#allocation2 + $0xb4] ss:$8 sps:$4 sm:$0xff]   ;;  %v50_v60 = vpack.c.bf16 %v44_v55, %v44_v55  ;;  %v1337_v62 = vld [vmem:[#allocation2 + $0xb0] ss:$8 sps:$4 sm:$0xff]   ;;  %v43_v63 = vld [vmem:[%s1593_s0 + $0x8] sm:$0xff]  ;;  %s1441_s20 = smov [#allocation5]  }
  0x28   :  { %v1286_v61 = vld [vmem:[#allocation2 + $0x214] ss:$8 sps:$4 sm:$0xff]   ;;  %v49_v1 = vpack.c.bf16 %v43_v63, %v43_v63  ;;  %v1284_v2 = vld [vmem:[#allocation2 + $0x210] ss:$8 sps:$4 sm:$0xff]   ;;  %v47_v3 = vld [vmem:[%s1593_s0 + $0x28] sm:$0xff]  ;;  %s1043_s21 = sshll.u32 %s1441_s20, 4  ;;  %s1044_s21 = int_to_ptr.vmem [resolvable:$true] %s1043_s21 }
  0x29   :  { %694 = vmatpush1.bf16.msra.mxu0 %v1241_v11  ;;  %v1292_v4 = vld [vmem:[#allocation2 + $0x224] ss:$8 sps:$4 sm:$0xff]   ;;  %v53_v5 = vpack.c.bf16 %v47_v3, %v47_v3  ;;  %v1343_v6 = vld [vmem:[#allocation2 + $0xc0] ss:$8 sps:$4 sm:$0xff]   ;;  %v1347_v7 = vld [vmem:[#allocation2 + $0xd4] ss:$8 sps:$4 sm:$0xff]   ;;  %p1415_p9 = scmp.lt.s32.totalorder %s1044_s21, %s1044_s21 }
  0x2a   :  { %695 = vmatprep.subr.bf16.mxu0 %v1242_v12  ;;  %651 = vmatpush1.bf16.msra.mxu1 %v1295_v31  ;;  %v1290_v8 = vld [vmem:[#allocation2 + $0x220] ss:$8 sps:$4 sm:$0xff]   ;;  %v1298_v9 = vld [vmem:[#allocation2 + $0x234] ss:$8 sps:$4 sm:$0xff]   ;;  %v1349_v10 = vld [vmem:[#allocation2 + $0xd0] ss:$8 sps:$4 sm:$0xff]  }
  0x2b   :  { %652 = vmatprep.subr.bf16.mxu1 %v1299_v33  ;;  %674 = vmatprep.mubr.bf16.mxu1 %v49_v1  ;;  %v1353_v11 = vld [vmem:[#allocation2 + $0xe4] ss:$8 sps:$4 sm:$0xff]   ;;  %v1296_v12 = vld [vmem:[#allocation2 + $0x230] ss:$8 sps:$4 sm:$0xff]   ;;  %v1355_v14 = vld [vmem:[#allocation2 + $0xe0] ss:$8 sps:$4 sm:$0xff]   ;;  %v152_v1 = vlaneseq }
  0x2c   :  { %v1304_v13 = vld [vmem:[#allocation2 + $0x244] ss:$8 sps:$4 sm:$0xff]   ;;  %v1361_v17 = vld [vmem:[#allocation2 + $0xf0] ss:$8 sps:$4 sm:$0xff]   ;;  %v1310_v19 = vld [vmem:[#allocation2 + $0x254] ss:$8 sps:$4 sm:$0xff]  }
  0x2d   :  { %696 = vmatpush1.bf16.msra.mxu0 %v1244_v15  ;;  %v1359_v15 = vld [vmem:[#allocation2 + $0xf4] ss:$8 sps:$4 sm:$0xff]   ;;  %v42_v18 = vld [vmem:[%s1593_s0] sm:$0xff]  ;;  %v1308_v22 = vld [vmem:[#allocation2 + $0x250] ss:$8 sps:$4 sm:$0xff]   ;;  %vm1035_vm5 = vcmask 64512  }
  0x2e   :  { %697 = vmatprep.subr.bf16.mxu0 %v1245_v16  ;;  %653 = vmatpush1.bf16.msra.mxu1 %v1301_v35  ;;  %v1302_v16 = vld [vmem:[#allocation2 + $0x240] ss:$8 sps:$4 sm:$0xff]   ;;  %v48_v21 = vpack.c.bf16 %v42_v18, %v42_v18  ;;  %v1372_v29 = vld [vmem:[%s1596_s3 + $0x50] sm:$0xff]   ;;  %v1374_v33 = vld [vmem:[%s1596_s3 + $0x58] sm:$0xff]  }
  0x2f   :  { %654 = vmatprep.subr.bf16.mxu1 %v1305_v37  ;;  %v1369_v23 = vld [vmem:[%s1596_s3] sm:$0xff]   ;;  %v1370_v25 = vld [vmem:[%s1596_s3 + $0x48] sm:$0xff]   ;;  %v1373_v31 = vld [vmem:[%s1596_s3 + $0x10] sm:$0xff]  }
  0x30   :  { %v1371_v27 = vld [vmem:[%s1596_s3 + $0x8] sm:$0xff]   ;;  %v1375_v35 = vld [vmem:[%s1596_s3 + $0x18] sm:$0xff]   ;;  %v1376_v37 = vld [vmem:[%s1596_s3 + $0x60] sm:$0xff]  }
  0x31   :  { %698 = vmatpush1.bf16.msra.mxu0 %v1247_v20  ;;  %v1368_v20 = vld [vmem:[%s1596_s3 + $0x40] sm:$0xff]   ;;  %v1379_v55 = vld [vmem:[%s1596_s3 + $0x28] sm:$0xff]  }
  0x32   :  { %699 = vmatprep.subr.bf16.mxu0 %v1248_v24  ;;  %655 = vmatpush1.bf16.msra.mxu1 %v1307_v39  ;;  %v1316_v24 = vld [vmem:[#allocation2 + $0x264] ss:$8 sps:$4 sm:$0xff]  }
  0x33   :  { %656 = vmatprep.subr.bf16.mxu1 %v1311_v41  ;;  %v1340_v39 = vld [vmem:[#allocation2 + $0x2a4] ss:$8 sps:$4 sm:$0xff]   ;;  %v1346_v41 = vld [vmem:[#allocation2 + $0x2b4] ss:$8 sps:$4 sm:$0xff]  }
  0x35   :  { %700 = vmatpush1.bf16.msra.mxu0 %v1250_v26  ;;  %v1314_v26 = vld [vmem:[#allocation2 + $0x260] ss:$8 sps:$4 sm:$0xff]  }
  0x36   :  { %701 = vmatprep.subr.bf16.mxu0 %v1251_v28  ;;  %657 = vmatpush1.bf16.msra.mxu1 %v1313_v43  ;;  %v1322_v28 = vld [vmem:[#allocation2 + $0x274] ss:$8 sps:$4 sm:$0xff]   ;;  %v1352_v43 = vld [vmem:[#allocation2 + $0x2c4] ss:$8 sps:$4 sm:$0xff]  }
  0x37   :  { %658 = vmatprep.subr.bf16.mxu1 %v1317_v45  ;;  %v1358_v45 = vld [vmem:[#allocation2 + $0x2d4] ss:$8 sps:$4 sm:$0xff]  }
  0x39   :  { %702 = vmatpush1.bf16.msra.mxu0 %v1253_v30  ;;  %v1320_v30 = vld [vmem:[#allocation2 + $0x270] ss:$8 sps:$4 sm:$0xff]  }
  0x3a   :  { %703 = vmatprep.subr.bf16.mxu0 %v1254_v32  ;;  %659 = vmatpush1.bf16.msra.mxu1 %v1319_v47  ;;  %v1328_v32 = vld [vmem:[#allocation2 + $0x284] ss:$8 sps:$4 sm:$0xff]  }
  0x3b   :  { %660 = vmatprep.subr.bf16.mxu1 %v1323_v49  ;;  %v1364_v47 = vld [vmem:[#allocation2 + $0x2e4] ss:$8 sps:$4 sm:$0xff]   ;;  %v1367_v49 = vld [vmem:[#allocation2 + $0x2f4] ss:$8 sps:$4 sm:$0xff]  }
  0x3d   :  { %704 = vmatpush1.bf16.msra.mxu0 %v1256_v34  ;;  %v1326_v34 = vld [vmem:[#allocation2 + $0x280] ss:$8 sps:$4 sm:$0xff]  }
  0x3e   :  { %705 = vmatprep.subr.bf16.mxu0 %v1257_v36  ;;  %661 = vmatpush1.bf16.msra.mxu1 %v1325_v51  ;;  %v1334_v36 = vld [vmem:[#allocation2 + $0x294] ss:$8 sps:$4 sm:$0xff]   ;;  %v46_v51 = vld [vmem:[%s1593_s0 + $0x20] sm:$0xff] }
  0x3f   :  { %662 = vmatprep.subr.bf16.mxu1 %v1329_v53  ;;  %v1377_v53 = vld [vmem:[%s1596_s3 + $0x20] sm:$0xff]  }
  0x41   :  { %706 = vmatpush1.bf16.msra.mxu0 %v1259_v38  ;;  %v1332_v38 = vld [vmem:[#allocation2 + $0x290] ss:$8 sps:$4 sm:$0xff]  }
  0x42   :  { %707 = vmatprep.subr.bf16.mxu0 %v1260_v40  ;;  %663 = vmatpush1.bf16.msra.mxu1 %v1331_v56  ;;  %v1338_v40 = vld [vmem:[#allocation2 + $0x2a0] ss:$8 sps:$4 sm:$0xff]   ;;  %v1380_v56 = vld [vmem:[%s1596_s3 + $0x70] sm:$0xff]  }
  0x43   :  { %664 = vmatprep.subr.bf16.mxu1 %v1335_v58  ;;  %v1382_v58 = vld [vmem:[%s1596_s3 + $0x78] sm:$0xff]  }
  0x45   :  { %708 = vmatpush1.bf16.msra.mxu0 %v1262_v42  ;;  %v1344_v42 = vld [vmem:[#allocation2 + $0x2b0] ss:$8 sps:$4 sm:$0xff]  }
  0x46   :  { %709 = vmatprep.subr.bf16.mxu0 %v1263_v44  ;;  %665 = vmatpush1.bf16.msra.mxu1 %v1337_v62  ;;  %v1350_v44 = vld [vmem:[#allocation2 + $0x2c0] ss:$8 sps:$4 sm:$0xff]  }
  0x47   :  { %666 = vmatprep.subr.bf16.mxu1 %v1341_v0 }
  0x49   :  { %710 = vmatpush1.bf16.msra.mxu0 %v1265_v46  ;;  %v1356_v46 = vld [vmem:[#allocation2 + $0x2d0] ss:$8 sps:$4 sm:$0xff]  }
  0x4a   :  { %711 = vmatprep.subr.bf16.mxu0 %v1266_v48  ;;  %667 = vmatpush1.bf16.msra.mxu1 %v1343_v6  ;;  %v1362_v48 = vld [vmem:[#allocation2 + $0x2e0] ss:$8 sps:$4 sm:$0xff]  }
  0x4b   :  { %668 = vmatprep.subr.bf16.mxu1 %v1347_v7 }
  0x4d   :  { %712 = vmatpush1.bf16.msra.mxu0 %v1268_v50  ;;  %v1365_v50 = vld [vmem:[#allocation2 + $0x2f0] ss:$8 sps:$4 sm:$0xff]  }
  0x4e   :  { %713 = vmatprep.subr.bf16.mxu0 %v1272_v52  ;;  %669 = vmatpush1.bf16.msra.mxu1 %v1349_v10  ;;  %v52_v52 = vpack.c.bf16 %v46_v51, %v46_v51 }
  0x4f   :  { %670 = vmatprep.subr.bf16.mxu1 %v1353_v11 }
  0x51   :  { %714 = vmatpush1.bf16.msra.mxu0 %v1274_v54  ;;  %v1378_v54 = vld [vmem:[%s1596_s3 + $0x68] sm:$0xff]  }
  0x52   :  { %724 = vmatprep.subr.bf16.mxu0 %v1280_v57  ;;  %671 = vmatpush1.bf16.msra.mxu1 %v1355_v14  ;;  %v1381_v57 = vld [vmem:[%s1596_s3 + $0x30] sm:$0xff]  }
  0x53   :  { %672 = vmatprep.subr.bf16.mxu1 %v1359_v15 }
  0x54   :  { %716 = vmatmul.mubr.bf16.vlgmr.msra.gmra.mrb[0].mxu0 %v50_v60  ;;  %v1439_v60 = vmov 0.0  }
  0x55   :  { %725 = vmatpush1.bf16.msra.mxu0 %v1278_v59  ;;  %756 = vmatprep.mubr.bf16.mxu0 %v53_v5  ;;  %v1383_v59 = vld [vmem:[%s1596_s3 + $0x38] sm:$0xff]  }
  0x56   :  { %726 = vmatprep.subr.bf16.mxu0 %v1286_v61  ;;  %673 = vmatpush1.bf16.msra.mxu1 %v1361_v17 }
  0x57   :  { %1171 = vmatprep.subr.bf16.mxu1 %v1368_v20 }
  0x59   :  { %727 = vmatpush1.bf16.msra.mxu0 %v1284_v2  ;;  %675 = vmatmul.mubr.bf16.vlgmr.msra.gmra.mrb[0].mxu1 %v48_v21  ;;  %v153_v2 = vshrl.u32 %v152_v1, 7  ;;  %v1384_v21 = vld [vmem:[%s1598_s5] sm:$0xff]  }
  0x5a   :  { %728 = vmatprep.subr.bf16.mxu0 %v1292_v4  ;;  %1172 = vmatpush3.bf16.msra.mxu1 %v1369_v23  ;;  %v150_v4 = vld [vmem:[%s1595_s2] sm:$0x3]  ;;  %v1385_v23 = vld [vmem:[%s1598_s5 + $0x8] sm:$0xff]  }
  0x5b   :  { %1173 = vmatprep.subr.bf16.mxu1 %v1370_v25  ;;  %v154_v3 = vsub.s32 0, %v153_v2  ;;  %v158_v5 = vsub.s32 1, %v153_v2  ;;  %v1387_v25 = vld [vmem:[%s1598_s5 + $0x18] sm:$0xff]  }
  0x5d   :  { %729 = vmatpush1.bf16.msra.mxu0 %v1290_v8  ;;  %v155_v6 = vrot.slane %v150_v4, %v154_v3  ;;  %v159_v7 = vrot.slane %v150_v4, %v158_v5 }
  0x5e   :  { %730 = vmatprep.subr.bf16.mxu0 %v1298_v9  ;;  %1174 = vmatpush3.bf16.msra.mxu1 %v1371_v27  ;;  %v1148_v27 = vld [vmem:[%s1597_s4] ss:$0 sm:$0xff]  ;;  %s1410_s4 = scalar_lea.vmem %s1044_s21, 128 }
  0x5f   :  { %1175 = vmatprep.subr.bf16.mxu1 %v1372_v29  ;;  %p1411_p8 = scmp.ne.s32.totalorder %s1044_s21, %s1410_s4  ;;  %p1416_p10 = scmp.lt.s32.totalorder %s1410_s4, %s1410_s4 }
  0x61   :  { %731 = vmatpush1.bf16.msra.mxu0 %v1296_v12  ;;  %p1417_p11 = por %p1416_p10, %p1415_p9 }
  0x62   :  { %732 = vmatprep.subr.bf16.mxu0 %v1304_v13  ;;  %1176 = vmatpush3.bf16.msra.mxu1 %v1373_v31 }
  0x63   :  { %1177 = vmatprep.subr.bf16.mxu1 %v1374_v33  ;;  %p1418_p12 = pnand %p1417_p11, %p1411_p8 }
  0x65   :  { %733 = vmatpush1.bf16.msra.mxu0 %v1302_v16 }
  0x66   :  { %734 = vmatprep.subr.bf16.mxu0 %v1310_v19  ;;  %1178 = vmatpush3.bf16.msra.mxu1 %v1375_v35 }
  0x67   :  { %1179 = vmatprep.subr.bf16.mxu1 %v1376_v37 }
  0x69   :  { %735 = vmatpush1.bf16.msra.mxu0 %v1308_v22 }
  0x6a   :  { %736 = vmatprep.subr.bf16.mxu0 %v1316_v24  ;;  %1180 = vmatpush3.bf16.msra.mxu1 %v1377_v53  ;;  %v1386_v24 = vld [vmem:[%s1598_s5 + $0x10] sm:$0xff]  }
  0x6b   :  { %1181 = vmatprep.subr.bf16.mxu1 %v1378_v54 }
  0x6d   :  { %737 = vmatpush1.bf16.msra.mxu0 %v1314_v26 }
  0x6e   :  { %738 = vmatprep.subr.bf16.mxu0 %v1322_v28  ;;  %1182 = vmatpush3.bf16.msra.mxu1 %v1379_v55 }
  0x6f   :  { %1183 = vmatprep.subr.bf16.mxu1 %v1380_v56 }
  0x71   :  { %739 = vmatpush1.bf16.msra.mxu0 %v1320_v30 }
  0x72   :  { %740 = vmatprep.subr.bf16.mxu0 %v1328_v32  ;;  %1184 = vmatpush3.bf16.msra.mxu1 %v1381_v57 }
  0x73   :  { %1185 = vmatprep.subr.bf16.mxu1 %v1382_v58 }
  0x75   :  { %741 = vmatpush1.bf16.msra.mxu0 %v1326_v34 }
  0x76   :  { %742 = vmatprep.subr.bf16.mxu0 %v1334_v36  ;;  %1186 = vmatpush3.bf16.msra.mxu1 %v1383_v59  ;;  %v1165_v36 = vld [vmem:[%s1599_s6] ss:$0 sm:$0xff] }
  0x77   :  { %1198 = vmatprep.subr.bf16.mxu1 %v1439_v60 }
  0x79   :  { %743 = vmatpush1.bf16.msra.mxu0 %v1332_v38 }
  0x7a   :  { %744 = vmatprep.subr.bf16.mxu0 %v1340_v39 }
  0x7d   :  { %745 = vmatpush1.bf16.msra.mxu0 %v1338_v40 }
  0x7e   :  { %746 = vmatprep.subr.bf16.mxu0 %v1346_v41 }
  0x81   :  { %747 = vmatpush1.bf16.msra.mxu0 %v1344_v42 }
  0x82   :  { %748 = vmatprep.subr.bf16.mxu0 %v1352_v43 }
  0x85   :  { %749 = vmatpush1.bf16.msra.mxu0 %v1350_v44 }
  0x86   :  { %750 = vmatprep.subr.bf16.mxu0 %v1358_v45 }
  0x89   :  { %751 = vmatpush1.bf16.msra.mxu0 %v1356_v46 }
  0x8a   :  { %752 = vmatprep.subr.bf16.mxu0 %v1364_v47 }
  0x8d   :  { %753 = vmatpush1.bf16.msra.mxu0 %v1362_v48 }
  0x8e   :  { %754 = vmatprep.subr.bf16.mxu0 %v1367_v49 }
  0x91   :  { %755 = vmatpush1.bf16.msra.mxu0 %v1365_v50 }
  0x94   :  { %757 = vmatmul.mubr.bf16.vlgmr.msra.gmra.mrb[0].mxu0 %v52_v52 }
 0x12c   :  { %v676_v61 = vpop.f32.mrb[0].mxu1 }
 0x12d   :  { %v678_v62 = vpop.f32.mrb[1].mxu1  ;;  %v677_v8 = vadd.f32 %v676_v61, %v155_v6 }
 0x12e   :  { %v680_v63 = vpop.f32.mrb[2].mxu1  ;;  %v679_v9 = vadd.f32 %v678_v62, %v159_v7 }
 0x12f   :  { %v681_v0 = vpop.f32.mrb[3].mxu1 }
 0x167   :  { %v758_v10 = vpop.f32.mrb[0].mxu0 }
 0x168   :  { %v1211_v11 = vadd.f32 %v758_v10, %v677_v8  ;;  %v760_v12 = vpop.f32.mrb[1].mxu0 }
 0x169   :  { %v1213_v13 = vadd.f32 %v760_v12, %v679_v9  ;;  %v762_v14 = vpop.f32.mrb[2].mxu0 }
 0x16a   :  { %vm765_vm0 = vcmp.gt.f32.partialorder %v1211_v11, 0.0  ;;  %v767_v15 = vmul.f32 0.01, %v1211_v11  ;;  %v763_v16 = vpop.f32.mrb[3].mxu0 }
 0x16b   :  { %vm766_vm1 = vcmp.gt.f32.partialorder %v1213_v13, 0.0  ;;  %v768_v17 = vmul.f32 0.01, %v1213_v13 }
 0x16c   :  { %v769_v18 = vsel %vm765_vm0, %v1211_v11, %v767_v15 }
 0x16d   :  { %v770_v19 = vsel %vm766_vm1, %v1213_v13, %v768_v17  ;;  %v771_v22 = vpack.c.bf16 %v769_v18, %v769_v18 }
 0x16e   :  { %v772_v20 = vpack.c.bf16 %v770_v19, %v770_v19 }
 0x170   :  { %940 = vmatprep.mubr.bf16.mxu1 %v772_v20 }
 0x171   :  { %941 = vmatmul.mubr.bf16.vlgmr.msra.gmra.mrb[4].mxu1 %v771_v22 }
 0x172   :  { %1199 = vmatpush3.bf16.msra.mxu1 %v1384_v21  ;;  %1206 = vmatprep.mubr.msk.bf16.mxu1 %vm1440_vm2, %v1439_v60 }
 0x173   :  { %1200 = vmatprep.subr.bf16.mxu1 %v1439_v60 }
 0x176   :  { %1201 = vmatpush3.bf16.msra.mxu1 %v1385_v23 }
 0x177   :  { %1202 = vmatprep.subr.bf16.mxu1 %v1439_v60 }
 0x17a   :  { %1203 = vmatpush3.bf16.msra.mxu1 %v1386_v24 }
 0x17b   :  { %1204 = vmatprep.subr.bf16.mxu1 %v1439_v60 }
 0x17e   :  { %1205 = vmatpush3.bf16.msra.mxu1 %v1387_v25 }
 0x244   :  { %v1187_v26 = vpop.f32.mrb[4].mxu1 }
 0x245   :  { %v1188_v28 = vpop.f32.mrb[5].mxu1 }
 0x246   :  { %v1189_v29 = vadd.f32 %v1188_v28, %v1187_v26  ;;  %v1190_v30 = vpop.f32.mrb[6].mxu1 }
 0x247   :  { %v1191_v31 = vpop.f32.mrb[7].mxu1 }
 0x248   :  { %v943_v32 = vadd.f32 %v1189_v29, %v1148_v27 }
 0x24a   :  { %vm948_vm3 = vcmp.gt.f32.partialorder %v943_v32, 0.0  ;;  %v949_v33 = vmul.f32 0.01, %v943_v32 }
 0x24c   :  { %v950_v34 = vsel %vm948_vm3, %v943_v32, %v949_v33 }
 0x24d   :  { %v951_v35 = vpack.c.bf16 %v950_v34, %v950_v34 }
 0x24f   :  { %1207 = vmatmul.mubr.msk.bf16.vlgmr.msra.gmra.mrb[8].mxu1 %vm991_vm4, %v951_v35 }
 0x322   :  { %v1029_v37 = vpop.f32.mrb[8].mxu1 }
 0x323   :  { %v1030_v38 = vadd.f32 %v1165_v36, %v1029_v37  ;;  %v1208_v39 = vpop.f32.mrb[9].mxu1 }
 0x324   :  { %v1032_v40 = vpop.f32.mrb[10].mxu1 }
 0x325   :  { %v1209_v41 = vpop.f32.mrb[11].mxu1  ;;  %1036 = vst.msk [vmem:[#allocation5] sm:$0xff] %vm1035_vm5, %v1030_v38 }
 0x326   :  { %1421 = shalt.err (!%p1418_p12)
}
 0x327   :  { %s1422_s6 = scalar_lea.hbm %s1600_s7, 128 }
 0x328   :  { %p1423_p13 = scmp.ne.s32.totalorder %s1600_s7, %s1422_s6  ;;  %p1426_p0 = scmp.lt.u32.totalorder %s1422_s6, %s1600_s7 }
 0x32a   :  { %p1428_p1 = pnand %p1426_p0, %p1423_p13 }
 0x32c   :  { %1431 = shalt.err (!%p1428_p1)
}
 0x32d   :  { %1046 = dma.vmem_to_hbm [thread:$0]  %s1044_s21, 128, %s1600_s7, [#allocation4]  }
 0x32e   :  { %1434 = dma.done.wait [#allocation4], 128  }
 0x32f   :  { %1435 = vsyncadd [#allocation4], 4294967168 }
 0x330   :  { %1050 = vsyncpa [#allocation3], 1 }
 0x331   :  { %1051 = vsyncpa [#allocation4], 1 }

</bundles_post_ra>
